<compile_context>
chip_gen: v6e
topology: v6e:2x2x1
jax: 0.10.0
libtpu: 0.0.40
codegen_flags: <defaults>
</compile_context>

<pallas_src>
import functools
import math
from typing import NamedTuple

import jax
import jax.numpy as jnp
from jax.experimental import pallas as pl
from jax.experimental.pallas import tpu as pltpu


class DiagGaussianDist(NamedTuple):
    # Mirrors DiagGaussianDist(mu, sig) returned by the PyTorch module's forward.
    mu: jax.Array   # [batch, out_size]
    sig: jax.Array  # [batch, out_size]


def _round_up(x: int, m: int) -> int:
    return ((x + m - 1) // m) * m


def _cdiv(a: int, b: int) -> int:
    return (a + b - 1) // b


# --------------------------------------------------------------------------------
# Kernels
# --------------------------------------------------------------------------------
def _head_kernel_packed(x_ref, w_ref, b_ref, low_ref, invr_ref, out_ref, acc_ref,
                        *, use_lim, min_var, out_size):
    """mu and sigma packed into one 128-lane slab (2*out_size <= 128)."""
    k = pl.program_id(1)

    @pl.when(k == 0)
    def _():
        acc_ref[...] = jnp.zeros_like(acc_ref)

    # MXU matmul, f32 accumulation.
    acc_ref[...] += jnp.dot(x_ref[...], w_ref[...],
                            preferred_element_type=jnp.float32)

    @pl.when(k == pl.num_programs(1) - 1)
    def _():
        z = acc_ref[...] + b_ref[...]                       # (tb, 128) f32
        # mu transform (kept lanes: [0, out_size))
        if use_lim:
            # verbatim module math: 0.5*(tanh+1)/(high-low) + low,
            # with 0.5/(high-low) pre-folded into inv_range at init.
            mu = (jnp.tanh(z) + 1.0) * invr_ref[...] + low_ref[...]
        else:
            mu = z
        # sigma transform (kept lanes: [out_size, 2*out_size))
        sp = jnp.maximum(z, 0.0) + jnp.log(1.0 + jnp.exp(-jnp.abs(z)))
        sig = jnp.sqrt(sp + min_var)
        lane = jax.lax.broadcasted_iota(jnp.int32, z.shape, 1)
        out_ref[...] = jnp.where(lane < out_size, mu, sig).astype(out_ref.dtype)


def _head_kernel_split(x_ref, w_ref, b_ref, low_ref, invr_ref, mu_ref, sig_ref,
                       acc_ref, *, use_lim, min_var):
    """Wide-head fallback: mu / sigma each get their own lane-dense slab."""
    k = pl.program_id(1)

    @pl.when(k == 0)
    def _():
        acc_ref[...] = jnp.zeros_like(acc_ref)

    acc_ref[...] += jnp.dot(x_ref[...], w_ref[...],
                            preferred_element_type=jnp.float32)

    @pl.when(k == pl.num_programs(1) - 1)
    def _():
        n_pad = mu_ref.shape[-1]        # lane-aligned (multiple of 128) split point
        # mu half (processed alone to bound vreg pressure; 128-aligned slices are free)
        zm = acc_ref[:, :n_pad] + b_ref[:, :n_pad]
        if use_lim:
            zm = (jnp.tanh(zm) + 1.0) * invr_ref[...] + low_ref[...]
        mu_ref[...] = zm.astype(mu_ref.dtype)
        # sigma half
        zs = acc_ref[:, n_pad:] + b_ref[:, n_pad:]
        sp = jnp.maximum(zs, 0.0) + jnp.log(1.0 + jnp.exp(-jnp.abs(zs)))
        sig_ref[...] = jnp.sqrt(sp + min_var).astype(sig_ref.dtype)


# --------------------------------------------------------------------------------
# Module wrapper: parameters packed ONCE at construction, never per call.
# --------------------------------------------------------------------------------
class DiagGaussianHeadTPU:
    _TB_CAP = 512                      # fits v7x 64 MiB plan; v5e/v6e have headroom
    _VMEM_BUDGET = 28 * 1024 * 1024    # target working set (v7x-safe with 2x margin)
    _WEIGHT_RESIDENT_BYTES = 8 * 1024 * 1024   # K-tile only above this

    def __init__(self, weight, bias, out_size, min_var=0.0, lim=None,
                 compute_dtype=None, out_dtype=jnp.float32):
        """weight: [2*out_size, in_size] (PyTorch nn.Linear layout), bias: [2*out_size]."""
        two_out, in_size = weight.shape
        assert two_out == 2 * out_size and bias.shape == (2 * out_size,)
        f32 = jnp.float32
        self.out_size = int(out_size)
        self.in_size = int(in_size)
        self.min_var = float(min_var)
        self.use_lim = lim is not None
        self.out_dtype = out_dtype
        self.compute_dtype = compute_dtype

        w_t = jnp.asarray(weight).T                       # [in, 2*out], one-time transpose
        if compute_dtype is not None:
            w_t = w_t.astype(compute_dtype)
        w_bytes = jnp.dtype(w_t.dtype).itemsize

        # ---- slab layout: one 128-lane slab when mu+sigma fit, else two slabs ----
        self.packed = (2 * out_size) <= 128
        if self.packed:
            self.n_slab = 128                             # output / low / inv_range width
            self.n_w = 128                                # weight & accumulator lane width
            mu_off, sig_off = 0, out_size
        else:
            self.n_slab = _round_up(out_size, 128)
            self.n_w = 2 * self.n_slab
            mu_off, sig_off = 0, self.n_slab

        # ---- K plan: whole weight resident unless it is huge ---------------------
        self.k_dim = _round_up(in_size, 128)
        if self.k_dim * self.n_w * w_bytes * 2 <= self._WEIGHT_RESIDENT_BYTES:
            self.tk = self.k_dim                          # single K block
        else:
            self.tk = 128
            for cand in (2048, 1024, 512, 256):
                if self.k_dim % cand == 0:
                    self.tk = cand
                    break

        # ---- one-time packed parameters (never rebuilt in forward) ---------------
        w_p = jnp.zeros((self.k_dim, self.n_w), w_t.dtype)
        w_p = w_p.at[:in_size, mu_off:mu_off + out_size].set(w_t[:, :out_size])
        w_p = w_p.at[:in_size, sig_off:sig_off + out_size].set(w_t[:, out_size:])
        self.w_packed = w_p

        b = jnp.asarray(bias, f32)
        b_p = jnp.zeros((1, self.n_w), f32)
        b_p = b_p.at[0, mu_off:mu_off + out_size].set(b[:out_size])
        b_p = b_p.at[0, sig_off:sig_off + out_size].set(b[out_size:])
        self.b_packed = b_p

        low_p = jnp.zeros((1, self.n_slab), f32)
        invr_p = jnp.zeros((1, self.n_slab), f32)
        if self.use_lim:
            low = jnp.asarray(lim[0], f32).reshape(out_size)
            high = jnp.asarray(lim[1], f32).reshape(out_size)
            low_p = low_p.at[0, :out_size].set(low)
            invr_p = invr_p.at[0, :out_size].set(0.5 / (high - low))
        self.low_packed = low_p
        self.invr_packed = invr_p

    # -- helpers ------------------------------------------------------------------
    def _vmem_bytes(self, tb, x_bytes):
        w_bytes = jnp.dtype(self.w_packed.dtype).itemsize
        o_bytes = jnp.dtype(self.out_dtype).itemsize
        n_out = 1 if self.packed else 2
        return (2 * tb * self.tk * x_bytes                  # x double buffer
                + 2 * self.tk * self.n_w * w_bytes          # weight double buffer
                + 2 * (self.n_w + 2 * self.n_slab) * 4      # bias / low / inv_range
                + n_out * 2 * tb * self.n_slab * o_bytes    # output double buffer(s)
                + tb * self.n_w * 4)                        # f32 accumulator

    def _pick_tb(self, batch, sub):
        tb = min(self._TB_CAP, _round_up(batch, sub))
        # >=2 grid steps on the ("parallel") batch axis so both v7x TCs get work.
        if _cdiv(batch, tb) < 2 and batch >= 2 * sub:
            tb = _round_up(_cdiv(batch, 2), sub)
        return max(sub, tb)

    # -- forward ------------------------------------------------------------------
    def __call__(self, x):
        batch, in_size = x.shape
        assert in_size == self.in_size
        if self.compute_dtype is not None and x.dtype != self.compute_dtype:
            x = x.astype(self.compute_dtype)
        x_bytes = jnp.dtype(x.dtype).itemsize
        sub = 16 if x_bytes == 2 else 8                     # bf16 sublane packing

        tb = self._pick_tb(batch, sub)
        while tb > sub and self._vmem_bytes(tb, x_bytes) > self._VMEM_BUDGET:
            tb = max(sub, _round_up(tb // 2, sub))

        b_pad = _round_up(batch, tb)
        if b_pad != batch or self.k_dim != in_size:
            # only pads the ragged remainder; skipped entirely when aligned
            x = jnp.pad(x, ((0, b_pad - batch), (0, self.k_dim - in_size)))

        grid = (b_pad // tb, self.k_dim // self.tk)
        vmem_limit = int(min(60 << 20, max(16 << 20, 2 * self._vmem_bytes(tb, x_bytes))))

        in_specs = [
            pl.BlockSpec((tb, self.tk), lambda i, k: (i, k)),          # x tile
            pl.BlockSpec((self.tk, self.n_w), lambda i, k: (k, 0)),    # packed weight (resident)
            pl.BlockSpec((1, self.n_w), lambda i, k: (0, 0)),          # packed bias
            pl.BlockSpec((1, self.n_slab), lambda i, k: (0, 0)),       # low
            pl.BlockSpec((1, self.n_slab), lambda i, k: (0, 0)),       # inv_range
        ]
        scratch = [pltpu.VMEM((tb, self.n_w), jnp.float32)]            # f32 accumulator
        cparams = pltpu.CompilerParams(
            dimension_semantics=("parallel", "arbitrary"),
            vmem_limit_bytes=vmem_limit,
        )
        args = (x, self.w_packed, self.b_packed, self.low_packed, self.invr_packed)

        if self.packed:
            kernel = functools.partial(_head_kernel_packed, use_lim=self.use_lim,
                                       min_var=self.min_var, out_size=self.out_size)
            out = pl.pallas_call(
                kernel,
                out_shape=jax.ShapeDtypeStruct((b_pad, self.n_slab), self.out_dtype),
                grid_spec=pltpu.PrefetchScalarGridSpec(
                    num_scalar_prefetch=0, grid=grid, in_specs=in_specs,
                    out_specs=pl.BlockSpec((tb, self.n_slab), lambda i, k: (i, 0)),
                    scratch_shapes=scratch),
                compiler_params=cparams,
            )(*args)
            mu = out[:batch, :self.out_size]
            sig = out[:batch, self.out_size:2 * self.out_size]
        else:
            kernel = functools.partial(_head_kernel_split, use_lim=self.use_lim,
                                       min_var=self.min_var)
            mu_p, sig_p = pl.pallas_call(
                kernel,
                out_shape=(jax.ShapeDtypeStruct((b_pad, self.n_slab), self.out_dtype),
                           jax.ShapeDtypeStruct((b_pad, self.n_slab), self.out_dtype)),
                grid_spec=pltpu.PrefetchScalarGridSpec(
                    num_scalar_prefetch=0, grid=grid, in_specs=in_specs,
                    out_specs=[pl.BlockSpec((tb, self.n_slab), lambda i, k: (i, 0)),
                               pl.BlockSpec((tb, self.n_slab), lambda i, k: (i, 0))],
                    scratch_shapes=scratch),
                compiler_params=cparams,
            )(*args)
            mu = mu_p[:batch, :self.out_size]
            sig = sig_p[:batch, :self.out_size]
        return DiagGaussianDist(mu=mu, sig=sig)


# --------------------------------------------------------------------------------
# Demo / correctness checks
# --------------------------------------------------------------------------------
if __name__ == "__main__":
    key = jax.random.PRNGKey(0)

    def torch_linear_init(k, in_size, out2):
        kw, kb = jax.random.split(k)
        bound = 1.0 / math.sqrt(in_size)
        w = jax.random.uniform(kw, (out2, in_size), jnp.float32, -bound, bound)
        b = jax.random.uniform(kb, (out2,), jnp.float32, -bound, bound)
        return w, b

    def reference(x, w, b, out_size, min_var, lim):
        z = jnp.dot(x, w.T, precision=jax.lax.Precision.HIGHEST) + b
        mu = z[:, :out_size]
        if lim is not None:
            low = jnp.asarray(lim[0], jnp.float32)[None, :]
            high = jnp.asarray(lim[1], jnp.float32)[None, :]
            mu = 0.5 * (jnp.tanh(mu) + 1.0) / (high - low) + low  # verbatim module formula
        sig = jnp.sqrt(jax.nn.softplus(z[:, out_size:]) + min_var)
        return mu, sig

    # ---- case 1: small head (packed single-slab path), lim=None ------------------
    batch, in_size, out_size = 8, 32, 6
    k1, k2, key = jax.random.split(key, 3)
    w, b = torch_linear_init(k1, in_size, 2 * out_size)
    x = jax.random.normal(k2, (batch, in_size), jnp.float32)

    head = DiagGaussianHeadTPU(w, b, out_size)
    d = head(x)
    mu = jax.block_until_ready(d.mu)
    sig = jax.block_until_ready(d.sig)
    mu_r, sig_r = reference(x, w, b, out_size, 0.0, None)
    assert mu.shape == (batch, out_size) and sig.shape == (batch, out_size)
    assert jnp.allclose(mu, mu_r, atol=1e-5, rtol=1e-5)
    assert jnp.allclose(sig, sig_r, atol=1e-5, rtol=1e-5)

    # ---- case 2: same head with lim (tanh-squashed mean) --------------------------
    lim = ([-1.0, -2.0, 0.0, -0.5, -3.0, -1.5], [1.0, 3.0, 0.5, 2.0, 1.0, 0.5])
    head_lim = DiagGaussianHeadTPU(w, b, out_size, lim=lim)
    d = head_lim(x)
    mu = jax.block_until_ready(d.mu)
    sig = jax.block_until_ready(d.sig)
    mu_r, sig_r = reference(x, w, b, out_size, 0.0, lim)
    assert jnp.allclose(mu, mu_r, atol=1e-5, rtol=1e-5)
    assert jnp.allclose(sig, sig_r, atol=1e-5, rtol=1e-5)

    # ---- case 3: wide head (split path), ragged batch, 2 batch tiles, lim, min_var -
    batch, in_size, out_size = 300, 256, 80
    min_var = 0.1
    k1, k2, key = jax.random.split(key, 3)
    w, b = torch_linear_init(k1, in_size, 2 * out_size)
    x = jax.random.normal(k2, (batch, in_size), jnp.float32)
    low = -1.0 - 0.1 * jnp.arange(out_size, dtype=jnp.float32)
    high = 1.0 + 0.05 * jnp.arange(out_size, dtype=jnp.float32)
    head_w = DiagGaussianHeadTPU(w, b, out_size, min_var=min_var, lim=(low, high))
    d = head_w(x)
    mu = jax.block_until_ready(d.mu)
    sig = jax.block_until_ready(d.sig)
    mu_r, sig_r = reference(x, w, b, out_size, min_var, (low, high))
    assert mu.shape == (batch, out_size) and sig.shape == (batch, out_size)
    assert jnp.allclose(mu, mu_r, atol=2e-4, rtol=2e-4)
    assert jnp.allclose(sig, sig_r, atol=2e-4, rtol=2e-4)

    # ---- case 4: bf16 compute path (f32 accumulation / epilogue / outputs) --------
    batch, in_size, out_size = 64, 128, 6
    k1, k2, key = jax.random.split(key, 3)
    w, b = torch_linear_init(k1, in_size, 2 * out_size)
    x = jax.random.normal(k2, (batch, in_size), jnp.float32)
    head_bf16 = DiagGaussianHeadTPU(w, b, out_size, compute_dtype=jnp.bfloat16)
    d = head_bf16(x)
    mu = jax.block_until_ready(d.mu)
    sig = jax.block_until_ready(d.sig)
    mu_r, sig_r = reference(x, w, b, out_size, 0.0, None)
    assert bool(jnp.all(jnp.isfinite(mu))) and bool(jnp.all(jnp.isfinite(sig)))
    assert jnp.allclose(mu, mu_r, atol=0.08, rtol=0.08)
    assert jnp.allclose(sig, sig_r, atol=0.08, rtol=0.08)

    print("KERNEL_OK")
</pallas_src>

<mosaic_0001>
module attributes {stable_mosaic.version = 11 : i64} {
  func.func @_head_kernel_packed(%arg0: i32, %arg1: i32, %arg2: memref<8x128xf32, #tpu.memory_space<vmem>>, %arg3: memref<128x128xf32, #tpu.memory_space<vmem>>, %arg4: memref<1x128xf32, #tpu.memory_space<vmem>>, %arg5: memref<1x128xf32, #tpu.memory_space<vmem>>, %arg6: memref<1x128xf32, #tpu.memory_space<vmem>>, %arg7: memref<8x128xf32, #tpu.memory_space<vmem>>, %arg8: memref<8x128xf32, #tpu.memory_space<vmem>>) attributes {dimension_semantics = [#tpu.dimension_semantics<parallel>, #tpu.dimension_semantics<arbitrary>], iteration_bounds = array<i64: 1, 1>, scalar_prefetch = 0 : i64, scratch_operands = 1 : i64, tpu.core_type = #tpu.core_type<tc>, window_params = [{transform_indices = @transform_0, window_bounds = array<i64: 8, 128>}, {transform_indices = @transform_1, window_bounds = array<i64: 128, 128>}, {pipeline_mode = #tpu.pipeline_mode<synchronous>, transform_indices = @transform_2, window_bounds = array<i64: 1, 128>}, {pipeline_mode = #tpu.pipeline_mode<synchronous>, transform_indices = @transform_3, window_bounds = array<i64: 1, 128>}, {pipeline_mode = #tpu.pipeline_mode<synchronous>, transform_indices = @transform_4, window_bounds = array<i64: 1, 128>}, {transform_indices = @transform_5, window_bounds = array<i64: 8, 128>}]} {
    %c0_i32 = arith.constant 0 : i32
    %0 = arith.cmpi eq, %arg1, %c0_i32 : i32
    %1 = arith.extui %0 : i1 to i32
    %c0_i32_0 = arith.constant 0 : i32
    %2 = arith.cmpi ne, %1, %c0_i32_0 : i32
    scf.if %2 {
      %cst_10 = arith.constant 0.000000e+00 : f32
      %12 = vector.broadcast %cst_10 : f32 to vector<8x128xf32>
      %c0_11 = arith.constant 0 : index
      %c0_12 = arith.constant 0 : index
      %13 = vector.load %arg8[%c0_11, %c0_12] : memref<8x128xf32, #tpu.memory_space<vmem>>, vector<8x128xf32>
      tpu.vector_store %arg8[%c0_11, %c0_12], %12 {strides = array<i32>} : memref<8x128xf32, #tpu.memory_space<vmem>>, vector<8x128xf32>,
    } else {
    }
    %c0 = arith.constant 0 : index
    %c0_1 = arith.constant 0 : index
    %3 = vector.load %arg8[%c0, %c0_1] : memref<8x128xf32, #tpu.memory_space<vmem>>, vector<8x128xf32>
    %c0_2 = arith.constant 0 : index
    %c0_3 = arith.constant 0 : index
    %4 = vector.load %arg2[%c0_2, %c0_3] : memref<8x128xf32, #tpu.memory_space<vmem>>, vector<8x128xf32>
    %c0_4 = arith.constant 0 : index
    %c0_5 = arith.constant 0 : index
    %5 = vector.load %arg3[%c0_4, %c0_5] : memref<128x128xf32, #tpu.memory_space<vmem>>, vector<128x128xf32>
    %cst = arith.constant dense<0.000000e+00> : vector<8x128xf32>
    %6 = tpu.matmul %4, %5, %cst {dimension_numbers = #tpu.dot_dimension_numbers<[1], [0], [0], [1], [0, 0, 1, 1], [], []>} : vector<8x128xf32>, vector<128x128xf32>, vector<8x128xf32> -> vector<8x128xf32>
    %7 = arith.addf %3, %6 : vector<8x128xf32>
    %c0_6 = arith.constant 0 : index
    %c0_7 = arith.constant 0 : index
    %8 = vector.load %arg8[%c0_6, %c0_7] : memref<8x128xf32, #tpu.memory_space<vmem>>, vector<8x128xf32>
    tpu.vector_store %arg8[%c0_6, %c0_7], %7 {strides = array<i32>} : memref<8x128xf32, #tpu.memory_space<vmem>>, vector<8x128xf32>,
    %c0_i32_8 = arith.constant 0 : i32
    %9 = arith.cmpi eq, %arg1, %c0_i32_8 : i32
    %10 = arith.extui %9 : i1 to i32
    %c0_i32_9 = arith.constant 0 : i32
    %11 = arith.cmpi ne, %10, %c0_i32_9 : i32
    scf.if %11 {
      %c0_10 = arith.constant 0 : index
      %c0_11 = arith.constant 0 : index
      %12 = vector.load %arg8[%c0_10, %c0_11] : memref<8x128xf32, #tpu.memory_space<vmem>>, vector<8x128xf32>
      %c0_12 = arith.constant 0 : index
      %c0_13 = arith.constant 0 : index
      %13 = vector.load %arg4[%c0_12, %c0_13] : memref<1x128xf32, #tpu.memory_space<vmem>>, vector<1x128xf32>
      %14 = vector.broadcast %13 : vector<1x128xf32> to vector<8x128xf32>
      %15 = arith.addf %12, %14 : vector<8x128xf32>
      %cst_14 = arith.constant 0.000000e+00 : f32
      %16 = vector.broadcast %cst_14 : f32 to vector<8x128xf32>
      %17 = arith.maximumf %15, %16 : vector<8x128xf32>
      %18 = math.absf %15 : vector<8x128xf32>
      %cst_15 = arith.constant 0.000000e+00 : f32
      %19 = vector.broadcast %cst_15 : f32 to vector<8x128xf32>
      %20 = arith.subf %19, %18 : vector<8x128xf32>
      %21 = math.exp %20 : vector<8x128xf32>
      %cst_16 = arith.constant 1.000000e+00 : f32
      %22 = vector.broadcast %cst_16 : f32 to vector<8x128xf32>
      %23 = arith.addf %22, %21 : vector<8x128xf32>
      %24 = math.log %23 : vector<8x128xf32>
      %25 = arith.addf %17, %24 : vector<8x128xf32>
      %cst_17 = arith.constant 0.000000e+00 : f32
      %26 = vector.broadcast %cst_17 : f32 to vector<8x128xf32>
      %27 = arith.addf %25, %26 : vector<8x128xf32>
      %28 = math.sqrt %27 : vector<8x128xf32>
      %29 = tpu.iota {dimensions = array<i32: 1>} : vector<8x128xi32>
      %c6_i32 = arith.constant 6 : i32
      %30 = vector.broadcast %c6_i32 : i32 to vector<8x128xi32>
      %31 = arith.cmpi slt, %29, %30 : vector<8x128xi32>
      %32 = arith.select %31, %15, %28 : vector<8x128xi1>, vector<8x128xf32>
      %c0_18 = arith.constant 0 : index
      %c0_19 = arith.constant 0 : index
      %33 = vector.load %arg7[%c0_18, %c0_19] : memref<8x128xf32, #tpu.memory_space<vmem>>, vector<8x128xf32>
      tpu.vector_store %arg7[%c0_18, %c0_19], %32 {strides = array<i32>} : memref<8x128xf32, #tpu.memory_space<vmem>>, vector<8x128xf32>,
    } else {
    }
    return
  }
  func.func @transform_0(%arg0: i32, %arg1: i32) -> (i32, i32) {
    %c0_i32 = arith.constant 0 : i32
    return %arg0, %arg1 : i32, i32
  }
  func.func @transform_1(%arg0: i32, %arg1: i32) -> (i32, i32) {
    %c0_i32 = arith.constant 0 : i32
    %c0_i32_0 = arith.constant 0 : i32
    return %arg1, %c0_i32 : i32, i32
  }
  func.func @transform_2(%arg0: i32, %arg1: i32) -> (i32, i32) {
    %c0_i32 = arith.constant 0 : i32
    %c0_i32_0 = arith.constant 0 : i32
    %c0_i32_1 = arith.constant 0 : i32
    return %c0_i32, %c0_i32_0 : i32, i32
  }
  func.func @transform_3(%arg0: i32, %arg1: i32) -> (i32, i32) {
    %c0_i32 = arith.constant 0 : i32
    %c0_i32_0 = arith.constant 0 : i32
    %c0_i32_1 = arith.constant 0 : i32
    return %c0_i32, %c0_i32_0 : i32, i32
  }
  func.func @transform_4(%arg0: i32, %arg1: i32) -> (i32, i32) {
    %c0_i32 = arith.constant 0 : i32
    %c0_i32_0 = arith.constant 0 : i32
    %c0_i32_1 = arith.constant 0 : i32
    return %c0_i32, %c0_i32_0 : i32, i32
  }
  func.func @transform_5(%arg0: i32, %arg1: i32) -> (i32, i32) {
    %c0_i32 = arith.constant 0 : i32
    %c0_i32_0 = arith.constant 0 : i32
    return %arg0, %c0_i32 : i32, i32
  }
}

</mosaic_0001>

<bundles_post_ra>
// kernel: tpu_custom_call.1
= control target key start
LH: loop header
LB: loop body
LE: loop exit
PB: predicated region body
PF: predicated region fallthrough
CT: control target
= control target key end

     0   :  { %10 = vsyncpa [#allocation4], 0  ;;  %s373_s0 = inlined_call_operand.hbm [shape: f32[8,128], index: 0, kind: input, shape index: {}]   ;;  %s374_s1 = inlined_call_operand.hbm [shape: f32[128,128], index: 1, kind: input, shape index: {}]   ;;  %s375_s2 = inlined_call_operand.vmem [shape: f32[1,128], index: 2, kind: input, shape index: {}]   ;;  %s376_s3 = inlined_call_operand.vmem [shape: f32[1,128], index: 3, kind: input, shape index: {}]   ;;  %s377_s4 = inlined_call_operand.vmem [shape: f32[1,128], index: 4, kind: input, shape index: {}]   ;;  %s378_s5 = inlined_call_operand.hbm [shape: f32[8,128], index: 5, kind: output, shape index: {}]  }
   0x1   :  { %11 = vsyncpa [#allocation7], 0 }
   0x2   :  { %12 = vsyncpa [#allocation5], 0  ;;  %s324_s18 = smov [#allocation3]   ;;  %s325_s20 = smov [#allocation6]  }
   0x3   :  { %s19_s19 = sshll.u32 %s324_s18, 4  ;;  %s28_s21 = sshll.u32 %s325_s20, 4  ;;  %s20_s19 = int_to_ptr.vmem [resolvable:$true] %s19_s19  ;;  %s29_s21 = int_to_ptr.vmem [resolvable:$true] %s28_s21 }
   0x4   :  { %s266_s22 = scalar_lea.vmem %s20_s19, 128  ;;  %p271_p1 = scmp.lt.s32.totalorder %s20_s19, %s20_s19 }
   0x5   :  { %p267_p0 = scmp.ne.s32.totalorder %s20_s19, %s266_s22  ;;  %p272_p2 = scmp.lt.s32.totalorder %s266_s22, %s266_s22 }
   0x7   :  { %p273_p3 = por %p272_p2, %p271_p1 }
   0x9   :  { %p274_p4 = pnand %p273_p3, %p267_p0 }
   0xb   :  { %277 = shalt.err (!%p274_p4)
}
   0xc   :  { %22 = dma.hbm_to_vmem [thread:$0]  %s373_s0, 128, %s20_s19, [#allocation4]  }
   0xd   :  { %s286_s23 = scalar_lea.vmem %s29_s21, 2048  ;;  %p291_p6 = scmp.lt.s32.totalorder %s29_s21, %s29_s21 }
   0xe   :  { %p287_p5 = scmp.ne.s32.totalorder %s29_s21, %s286_s23  ;;  %p292_p7 = scmp.lt.s32.totalorder %s286_s23, %s286_s23 }
  0x10   :  { %p293_p8 = por %p292_p7, %p291_p6 }
  0x12   :  { %p294_p9 = pnand %p293_p8, %p287_p5 }
  0x14   :  { %297 = shalt.err (!%p294_p9)
}
  0x15   :  { %s326_s24 = smov 128   ;;  %s327_s25 = smov 8  }
  0x16   :  { %34 = dma.hbm_to_vmem [thread:$0]  %s374_s1, 2048, %s29_s21, [#allocation7], %s326_s24, %s326_s24, %s327_s25  }
  0x17   :  { %318 = dma.done.wait [#allocation4], 128  }
  0x18   :  { %319 = vsyncadd [#allocation4], 4294967168 }
  0x19   :  { %320 = dma.done.wait [#allocation7], 2048  }
  0x1a   :  { %321 = vsyncadd [#allocation7], 4294965248  ;;  %v328_v0 = vmov 0.0   ;;  %vm329_vm0 = vmmov 0   ;;  %v69_v1 = vld [vmem:[#allocation6 + $0x78] sm:$0xff]  ;;  %v68_v2 = vld [vmem:[#allocation6 + $0x70] sm:$0xff]  ;;  %v171_v31 = vlaneseq }
  0x1b   :  { %210 = vmatprep.subr.mxu0 %v328_v0  ;;  %242 = vmatprep.mubr.msk.f32.mxu0 %vm329_vm0, %v328_v0  ;;  %v67_v3 = vld [vmem:[#allocation6 + $0x68] sm:$0xff]  ;;  %v66_v4 = vld [vmem:[#allocation6 + $0x60] sm:$0xff]  ;;  %v65_v5 = vld [vmem:[#allocation6 + $0x58] sm:$0xff] }
  0x1c   :  { %211 = vmatpush3.msra.mxu0 %v69_v1  ;;  %v64_v6 = vld [vmem:[#allocation6 + $0x50] sm:$0xff]  ;;  %v63_v7 = vld [vmem:[#allocation6 + $0x48] sm:$0xff]  ;;  %v62_v8 = vld [vmem:[#allocation6 + $0x40] sm:$0xff]  ;;  %v172_v32 = vand.u32 127, %v171_v31 }
  0x1d   :  { %212 = vmatprep.subr.mxu0 %v328_v0  ;;  %v61_v9 = vld [vmem:[#allocation6 + $0x38] sm:$0xff]  ;;  %v60_v10 = vld [vmem:[#allocation6 + $0x30] sm:$0xff]  ;;  %v59_v11 = vld [vmem:[#allocation6 + $0x28] sm:$0xff] }
  0x1e   :  { %213 = vmatpush3.msra.mxu0 %v68_v2  ;;  %v58_v12 = vld [vmem:[#allocation6 + $0x20] sm:$0xff]  ;;  %v57_v13 = vld [vmem:[#allocation6 + $0x18] sm:$0xff]  ;;  %v56_v14 = vld [vmem:[#allocation6 + $0x10] sm:$0xff]  ;;  %vm173_vm2 = vcmp.lt.s32.totalorder %v172_v32, 6 }
  0x1f   :  { %214 = vmatprep.subr.mxu0 %v328_v0  ;;  %v55_v15 = vld [vmem:[#allocation6 + $0x8] sm:$0xff]  ;;  %v54_v16 = vld [vmem:[#allocation6] sm:$0xff]  ;;  %v53_v17 = vld [vmem:[#allocation3] sm:$0xff] }
  0x20   :  { %215 = vmatpush3.msra.mxu0 %v67_v3  ;;  %v192_v18 = vld [vmem:[%s375_s2] ss:$0 sm:$0xff]  ;;  %s330_s2 = smov [#allocation8]  }
  0x21   :  { %216 = vmatprep.subr.mxu0 %v328_v0  ;;  %s182_s28 = sshll.u32 %s330_s2, 4  ;;  %s183_s28 = int_to_ptr.vmem [resolvable:$true] %s182_s28 }
  0x22   :  { %217 = vmatpush3.msra.mxu0 %v66_v4  ;;  %s298_s29 = scalar_lea.vmem %s183_s28, 128  ;;  %p303_p11 = scmp.lt.s32.totalorder %s183_s28, %s183_s28 }
  0x23   :  { %218 = vmatprep.subr.mxu0 %v328_v0  ;;  %p299_p10 = scmp.ne.s32.totalorder %s183_s28, %s298_s29  ;;  %p304_p12 = scmp.lt.s32.totalorder %s298_s29, %s298_s29 }
  0x24   :  { %219 = vmatpush3.msra.mxu0 %v65_v5 }
  0x25   :  { %220 = vmatprep.subr.mxu0 %v328_v0  ;;  %p305_p13 = por %p304_p12, %p303_p11 }
  0x26   :  { %221 = vmatpush3.msra.mxu0 %v64_v6 }
  0x27   :  { %222 = vmatprep.subr.mxu0 %v328_v0  ;;  %p306_p0 = pnand %p305_p13, %p299_p10 }
  0x28   :  { %223 = vmatpush3.msra.mxu0 %v63_v7 }
  0x29   :  { %224 = vmatprep.subr.mxu0 %v328_v0 }
  0x2a   :  { %225 = vmatpush3.msra.mxu0 %v62_v8 }
  0x2b   :  { %226 = vmatprep.subr.mxu0 %v328_v0 }
  0x2c   :  { %227 = vmatpush3.msra.mxu0 %v61_v9 }
  0x2d   :  { %228 = vmatprep.subr.mxu0 %v328_v0 }
  0x2e   :  { %229 = vmatpush3.msra.mxu0 %v60_v10 }
  0x2f   :  { %230 = vmatprep.subr.mxu0 %v328_v0 }
  0x30   :  { %231 = vmatpush3.msra.mxu0 %v59_v11 }
  0x31   :  { %232 = vmatprep.subr.mxu0 %v328_v0 }
  0x32   :  { %233 = vmatpush3.msra.mxu0 %v58_v12 }
  0x33   :  { %234 = vmatprep.subr.mxu0 %v328_v0 }
  0x34   :  { %235 = vmatpush3.msra.mxu0 %v57_v13 }
  0x35   :  { %236 = vmatprep.subr.mxu0 %v328_v0 }
  0x36   :  { %237 = vmatpush3.msra.mxu0 %v56_v14 }
  0x37   :  { %238 = vmatprep.subr.mxu0 %v328_v0 }
  0x38   :  { %239 = vmatpush3.msra.mxu0 %v55_v15 }
  0x39   :  { %240 = vmatprep.subr.mxu0 %v328_v0 }
  0x3a   :  { %241 = vmatpush3.msra.mxu0 %v54_v16 }
  0x3b   :  { %243 = vmatmul.mubr.f32.vlgmr.msra.gmra.mxu0 %v53_v17 }
  0xfb   :  { %v136_v19 = vpop.f32.mrf.mxu0 }
  0xfc   :  { %v153_v20 = vadd.f32 %v192_v18, %v136_v19 }
  0xfd   :  { %v244_v21 = vpop.f32.mrf.mxu0 }
  0xfe   :  { %v155_v22 = vand.u32 2147483647, %v153_v20  ;;  %v154_v28 = vmax.f32 %v153_v20, 0.0 }
 0x100   :  { %v156_v23 = vsub.f32 0.0, %v155_v22 }
 0x102   :  { %v157_v24 = vmul.f32 1.442695, %v156_v23 }
 0x104   :  { %252 = vpow2.f32 %v157_v24 }
 0x111   :  { %v253_v25 = vpop.eup %252 }
 0x112   :  { %v159_v26 = vadd.f32 1.0, %v253_v25 }
 0x114   :  { %254 = vlog2.f32 %v159_v26 }
 0x121   :  { %v255_v27 = vpop.eup %254 }
 0x122   :  { %v161_v29 = vmul.f32 0.6931472, %v255_v27 }
 0x124   :  { %v162_v30 = vadd.f32 %v161_v29, %v154_v28 }
 0x126   :  { %256 = vrsqrt.f32 %v162_v30  ;;  %vm166_vm1 = vcmp.eq.f32.partialorder %v162_v30, inf  ;;  %v169_v35 = vand.u32 2147483648, %v162_v30  ;;  %vm168_vm3 = vcmp.eq.f32.partialorder %v162_v30, 0.0 }
 0x133   :  { %v257_v33 = vpop.eup %256 }
 0x134   :  { %v165_v34 = vmul.f32 %v257_v33, %v162_v30 }
 0x136   :  { %v167_v36 = vsel %vm166_vm1, %v162_v30, %v165_v34 }
 0x137   :  { %v170_v37 = vsel %vm168_vm3, %v169_v35, %v167_v36 }
 0x138   :  { %v174_v38 = vsel %vm173_vm2, %v153_v20, %v170_v37 }
 0x139   :  { %175 = vst [vmem:[#allocation8] sm:$0xff] %v174_v38 }
 0x13a   :  { %309 = shalt.err (!%p306_p0)
}
 0x13b   :  { %185 = dma.vmem_to_hbm [thread:$0]  %s183_s28, 128, %s378_s5, [#allocation5]  }
 0x13c   :  { %322 = dma.done.wait [#allocation5], 128  }
 0x13d   :  { %323 = vsyncadd [#allocation5], 4294967168 }
 0x13e   :  { %189 = vsyncpa [#allocation4], 1 }
 0x13f   :  { %190 = vsyncpa [#allocation7], 1 }
 0x140   :  { %191 = vsyncpa [#allocation5], 1 }

</bundles_post_ra>
